<compile_context>
chip_gen: v6e
topology: v6e:2x2x1
jax: 0.10.0
libtpu: 0.0.40
codegen_flags: <defaults>
</compile_context>

<pallas_src>
import jax
import jax.numpy as jnp
from jax.experimental import pallas as pl
from jax.experimental.pallas import tpu as pltpu

IN_F, HID_F, OUT_F = 2, 3, 1
LANE = 128          # lane granularity of the batch axis
MAX_TB = 65536      # max batch-lanes per block (multiple of 128)


def fused_affine_kernel(s_ref, xt_ref, o_ref):
    # s_ref : (3,) f32 in SMEM = [w_a, w_b, b_eff]   (folded eval-mode params)
    # xt_ref: (IN_F, tb) f32 in VMEM, feature-major (batch on the 128-lane axis)
    # o_ref : (1, tb) f32 in VMEM (lane-dense output)
    o_ref[...] = (s_ref[0] * xt_ref[0:1, :]
                  + s_ref[1] * xt_ref[1:2, :]
                  + s_ref[2])


def fold_params(w1, b1, w2, b2):
    """Eval-mode folding (dropout == identity): y = x @ (w2@w1).T + (w2@b1 + b2).

    Call once, outside the per-forward path."""
    w_eff = (w2 @ w1).reshape(-1)          # (2,)
    b_eff = (w2 @ b1 + b2).reshape(())     # scalar
    return jnp.array([w_eff[0], w_eff[1], b_eff], jnp.float32)   # (3,)


def my_model_forward_t(xt, folded_scalars):
    """Feature-major entry point.  xt: (2, B) f32, folded_scalars: (3,) f32 -> (B, 1)."""
    in_f, B = xt.shape
    assert in_f == IN_F

    if B <= MAX_TB:
        tb, grid_b = B, 1                          # single full-array block
    else:
        tb, grid_b = MAX_TB, pl.cdiv(B, MAX_TB)    # partial edge block handled by Pallas

    out = pl.pallas_call(
        fused_affine_kernel,
        out_shape=jax.ShapeDtypeStruct((1, B), jnp.float32),
        grid=(grid_b,),
        in_specs=[
            pl.BlockSpec(memory_space=pltpu.MemorySpace.SMEM),   # folded scalars
            pl.BlockSpec((IN_F, tb), lambda i: (0, i)),          # batch tile of xt
        ],
        out_specs=pl.BlockSpec((1, tb), lambda i: (0, i)),
        compiler_params=pltpu.CompilerParams(
            dimension_semantics=("parallel",)),                  # megacore when grid > 1
    )(folded_scalars, xt)

    # (1, B) -> (B, 1) keeps the same element order: free view, no extra HBM pass.
    return out.reshape(B, OUT_F)


def my_model_forward(x, folded_scalars):
    """Convenience wrapper matching the PyTorch layout.  x: (B, 2) f32 -> (B, 1)."""
    xt = x.astype(jnp.float32).T               # (2, B); only 2*B floats of traffic
    return my_model_forward_t(xt, folded_scalars)


def init_params(key):
    """Deterministic init mimicking torch.nn.Linear default (U[-1/sqrt(fan_in), +])."""
    k1, k2, k3, k4 = jax.random.split(key, 4)
    bound1 = 1.0 / jnp.sqrt(jnp.float32(IN_F))
    bound2 = 1.0 / jnp.sqrt(jnp.float32(HID_F))
    w1 = jax.random.uniform(k1, (HID_F, IN_F), jnp.float32, -bound1, bound1)
    b1 = jax.random.uniform(k2, (HID_F,), jnp.float32, -bound1, bound1)
    w2 = jax.random.uniform(k3, (OUT_F, HID_F), jnp.float32, -bound2, bound2)
    b2 = jax.random.uniform(k4, (OUT_F,), jnp.float32, -bound2, bound2)
    return w1, b1, w2, b2


if __name__ == "__main__":
    key = jax.random.PRNGKey(0)
    kx, kp = jax.random.split(key)

    batch = 8
    x = jax.random.normal(kx, (batch, IN_F), jnp.float32)
    w1, b1, w2, b2 = init_params(kp)

    folded = fold_params(w1, b1, w2, b2)   # hoisted out of the per-call path
    out = my_model_forward(x, folded)
    out = jax.block_until_ready(out)

    # reference check in plain JAX (eval-mode dropout == identity)
    ref = (x @ w1.T + b1) @ w2.T + b2
    assert out.shape == (batch, OUT_F)
    assert jnp.allclose(out, ref, atol=1e-5, rtol=1e-5), (out, ref)

    print("KERNEL_OK")
</pallas_src>

<mosaic_0001>
module attributes {stable_mosaic.version = 11 : i64} {
  func.func @fused_affine_kernel(%arg0: i32, %arg1: memref<3xf32, #tpu.memory_space<smem>>, %arg2: memref<2x8xf32, #tpu.memory_space<vmem>>, %arg3: memref<1x8xf32, #tpu.memory_space<vmem>>) attributes {dimension_semantics = [#tpu.dimension_semantics<parallel>], iteration_bounds = array<i64: 1>, scalar_prefetch = 0 : i64, scratch_operands = 0 : i64, tpu.core_type = #tpu.core_type<tc>, window_params = [{transform_indices = @transform_0, window_bounds = array<i64: 3>}, {transform_indices = @transform_1, window_bounds = array<i64: 2, 8>}, {transform_indices = @transform_2, window_bounds = array<i64: 1, 8>}]} {
    %c0 = arith.constant 0 : index
    %0 = memref.load %arg1[%c0] : memref<3xf32, #tpu.memory_space<smem>>
    %c0_0 = arith.constant 0 : index
    %c0_1 = arith.constant 0 : index
    %1 = vector.load %arg2[%c0_0, %c0_1] : memref<2x8xf32, #tpu.memory_space<vmem>>, vector<1x8xf32>
    %2 = vector.broadcast %0 : f32 to vector<1x8xf32>
    %3 = arith.mulf %2, %1 : vector<1x8xf32>
    %c1 = arith.constant 1 : index
    %4 = memref.load %arg1[%c1] : memref<3xf32, #tpu.memory_space<smem>>
    %c1_2 = arith.constant 1 : index
    %c0_3 = arith.constant 0 : index
    %5 = vector.load %arg2[%c1_2, %c0_3] : memref<2x8xf32, #tpu.memory_space<vmem>>, vector<1x8xf32>
    %6 = vector.broadcast %4 : f32 to vector<1x8xf32>
    %7 = arith.mulf %6, %5 : vector<1x8xf32>
    %8 = arith.addf %3, %7 : vector<1x8xf32>
    %c2 = arith.constant 2 : index
    %9 = memref.load %arg1[%c2] : memref<3xf32, #tpu.memory_space<smem>>
    %10 = vector.broadcast %9 : f32 to vector<1x8xf32>
    %11 = arith.addf %8, %10 : vector<1x8xf32>
    %c0_4 = arith.constant 0 : index
    %c0_5 = arith.constant 0 : index
    %12 = vector.load %arg3[%c0_4, %c0_5] : memref<1x8xf32, #tpu.memory_space<vmem>>, vector<1x8xf32>
    tpu.vector_store %arg3[%c0_4, %c0_5], %11 {strides = array<i32>} : memref<1x8xf32, #tpu.memory_space<vmem>>, vector<1x8xf32>,
    return
  }
  func.func @transform_0(%arg0: i32) -> i32 {
    %c0_i32 = arith.constant 0 : i32
    %c0_i32_0 = arith.constant 0 : i32
    return %c0_i32 : i32
  }
  func.func @transform_1(%arg0: i32) -> (i32, i32) {
    %c0_i32 = arith.constant 0 : i32
    %c0_i32_0 = arith.constant 0 : i32
    return %c0_i32, %arg0 : i32, i32
  }
  func.func @transform_2(%arg0: i32) -> (i32, i32) {
    %c0_i32 = arith.constant 0 : i32
    %c0_i32_0 = arith.constant 0 : i32
    return %c0_i32, %arg0 : i32, i32
  }
}

</mosaic_0001>

<bundles_post_ra>
// kernel: tpu_custom_call.1
= control target key start
LH: loop header
LB: loop body
LE: loop exit
PB: predicated region body
PF: predicated region fallthrough
CT: control target
= control target key end

     0   :  { %7 = vsyncpa [#allocation5], 0  ;;  %s151_s0 = inlined_call_operand.hbm [shape: f32[3], index: 0, kind: input, shape index: {}]   ;;  %s152_s1 = inlined_call_operand.hbm [shape: f32[2,8], index: 1, kind: input, shape index: {}]   ;;  %s153_s2 = inlined_call_operand.hbm [shape: f32[1,8], index: 2, kind: output, shape index: {}]  }
   0x1   :  { %8 = vsyncpa [#allocation3], 0 }
   0x2   :  { %9 = vsyncpa [#allocation4], 0  ;;  %s124_s9 = smov [#allocation2]   ;;  %s125_s12 = smov [#allocation6]  }
   0x3   :  { %17 = dma.hbm_to_smem %s151_s0, 16, %s124_s9, [#allocation5]  }
   0x4   :  { %s24_s13 = sshll.u32 %s125_s12, 4  ;;  %s25_s13 = int_to_ptr.vmem [resolvable:$true] %s24_s13 }
   0x5   :  { %s86_s14 = scalar_lea.vmem %s25_s13, 32  ;;  %p91_p1 = scmp.lt.s32.totalorder %s25_s13, %s25_s13 }
   0x6   :  { %p87_p0 = scmp.ne.s32.totalorder %s25_s13, %s86_s14  ;;  %p92_p2 = scmp.lt.s32.totalorder %s86_s14, %s86_s14 }
   0x8   :  { %p93_p3 = por %p92_p2, %p91_p1 }
   0xa   :  { %p94_p4 = pnand %p93_p3, %p87_p0 }
   0xc   :  { %97 = shalt.err (!%p94_p4)
}
   0xd   :  { %27 = dma.hbm_to_vmem [thread:$0]  %s152_s1, 32, %s25_s13, [#allocation3]  }
   0xe   :  { %118 = dma.done.wait [#allocation5], 16  }
   0xf   :  { %119 = vsyncadd [#allocation5], 4294967280 }
  0x10   :  { %120 = dma.done.wait [#allocation3], 32  }
  0x11   :  { %121 = vsyncadd [#allocation3], 4294967264 }
  0x12   :  { %34 = sfence }
  0x13   :  { %s35_s0 = sld [smem:[#allocation2]]  ;;  %v36_v0 = vld [vmem:[#allocation6] sm:$0x1]  ;;  %v40_v1 = vld [vmem:[#allocation6 + $0x1] sm:$0x1]  ;;  %s126_s19 = smov [#allocation7]  }
  0x14   :  { %s65_s17 = sld [smem:[#allocation2 + $0x1]]  ;;  %s55_s20 = sshll.u32 %s126_s19, 4  ;;  %vm47_vm0 = vcmask 57344   ;;  %s56_s20 = int_to_ptr.vmem [resolvable:$true] %s55_s20 }
  0x15   :  { %s66_s18 = sld [smem:[#allocation2 + $0x2]]  ;;  %s98_s1 = scalar_lea.vmem %s56_s20, 16 }
  0x16   :  { %p99_p5 = scmp.ne.s32.totalorder %s56_s20, %s98_s1  ;;  %s102_s21 = scalar_lea.vmem %s56_s20, 32 }
  0x17   :  { %p103_p6 = scmp.lt.s32.totalorder %s56_s20, %s56_s20  ;;  %p104_p7 = scmp.lt.s32.totalorder %s102_s21, %s98_s1 }
  0x19   :  { %v37_v2 = vstv %s35_s0  ;;  %p105_p8 = por %p104_p7, %p103_p6 }
  0x1a   :  { %v38_v3 = vmul.f32 %v37_v2, %v36_v0  ;;  %v41_v4 = vstv %s65_s17 }
  0x1b   :  { %v42_v5 = vmul.f32 %v41_v4, %v40_v1  ;;  %v45_v6 = vstv %s66_s18  ;;  %p106_p9 = pnand %p105_p8, %p99_p5 }
  0x1d   :  { %v43_v7 = vadd.f32 %v42_v5, %v38_v3 }
  0x1f   :  { %v46_v8 = vadd.f32 %v45_v6, %v43_v7 }
  0x21   :  { %48 = vst.msk [vmem:[#allocation7] sm:$0x1] %vm47_vm0, %v46_v8 }
  0x22   :  { %109 = shalt.err (!%p106_p9)
}
  0x23   :  { %58 = dma.vmem_to_hbm [thread:$0]  %s56_s20, 16, %s153_s2, [#allocation4]  }
  0x24   :  { %122 = dma.done.wait [#allocation4], 16  }
  0x25   :  { %123 = vsyncadd [#allocation4], 4294967280 }
  0x26   :  { %62 = vsyncpa [#allocation3], 1 }
  0x27   :  { %63 = vsyncpa [#allocation4], 1 }
  0x28   :  { %64 = vsyncpa [#allocation5], 1 }

</bundles_post_ra>
